<compile_context>
chip_gen: v6e
topology: v6e:2x2x1
jax: 0.10.0
libtpu: 0.0.40
codegen_flags: <defaults>
</compile_context>

<pallas_src>
import functools

import jax
import jax.numpy as jnp
from jax.experimental import pallas as pl
from jax.experimental.pallas import tpu as pltpu

EPS = 1e-5


# --------------------------------------------------------------------------------------
# Kernel: one (bm, Cp) batch tile per grid step.  BN already folded into w/b.
# --------------------------------------------------------------------------------------
def _residual_block_kernel(x_ref, w1_ref, b1_ref, w2_ref, b2_ref, o_ref):
    # ---- Linear1 (+ folded BN1): bf16 operands on the MXU, f32 accumulate ----
    h = jnp.dot(x_ref[...].astype(w1_ref.dtype), w1_ref[...],
                preferred_element_type=jnp.float32)
    # ---- bias + ReLU (Dropout p=0.1 is identity in eval mode) ----
    h = jnp.maximum(h + b1_ref[...], 0.0)

    # ---- Linear2 (+ folded BN2) ----
    h = jnp.dot(h.astype(w2_ref.dtype), w2_ref[...],
                preferred_element_type=jnp.float32)
    h = h + b2_ref[...]

    # ---- Residual add + ReLU: re-read x in f32 only here (short live range) ----
    o_ref[...] = jnp.maximum(x_ref[...].astype(jnp.float32) + h, 0.0).astype(o_ref.dtype)


# --------------------------------------------------------------------------------------
# Wrapper helpers
# --------------------------------------------------------------------------------------
def fold_params(p, mxu_dtype=jnp.bfloat16):
    """Fold eval-mode BatchNorm + Linear bias into the weights.

    y = ((x @ W^T + b) - mean) * gamma/sqrt(var+eps) + beta
      =  x @ (W^T * s)  +  (b - mean) * s + beta,   s = gamma * rsqrt(var + eps)
    Weights are returned pre-transposed to (C_in, C_out) and cast to the MXU dtype.
    """
    C = p["w1"].shape[0]
    s1 = p["gamma1"] * jax.lax.rsqrt(p["var1"] + EPS)
    s2 = p["gamma2"] * jax.lax.rsqrt(p["var2"] + EPS)

    w1 = (p["w1"].T * s1[None, :]).astype(mxu_dtype)
    b1 = ((p["b1"] - p["mean1"]) * s1 + p["beta1"]).astype(jnp.float32).reshape(1, C)
    w2 = (p["w2"].T * s2[None, :]).astype(mxu_dtype)
    b2 = ((p["b2"] - p["mean2"]) * s2 + p["beta2"]).astype(jnp.float32).reshape(1, C)
    return w1, b1, w2, b2


def _vmem_plan():
    """(vmem_limit_bytes_cap, tiling_budget_bytes, is_v7x_class)."""
    try:
        cap = int(pltpu.get_tpu_info().vmem_capacity_bytes)
    except Exception:
        cap = 64 * 1024 * 1024  # conservative: assume the smaller (v7x-sized) VMEM
    if cap <= 64 * 1024 * 1024:           # v7x-class: 64 MiB physical per TC
        return 48 * 1024 * 1024, 40 * 1024 * 1024, True
    return 100 * 1024 * 1024, 88 * 1024 * 1024, False  # v5e / v6e: 128 MiB physical


def _choose_bm(B, C, *, budget_bytes, w_itemsize=2, is_v7x=False, max_bm=1024):
    """Largest MXU-aligned batch tile that fits the VMEM budget."""
    # Two (C, C) weight operands, single-buffered (constant index_map + Buffered(1)),
    # plus two tiny folded biases.
    weight_bytes = 2 * C * C * w_itemsize + 2 * C * 4

    def act_bytes(bm):
        # 2x double-buffered x tile + 2x double-buffered out tile (f32)
        # + 1x f32 intermediate + ~1x bf16 casts.
        return bm * C * 4 * 6

    bm = min(B, max_bm)
    if is_v7x and B >= 256:
        # Guarantee >= 2 grid steps so megacore sharding feeds both TensorCores.
        bm = min(bm, max(128, (pl.cdiv(B, 2) // 128) * 128))
    if bm < B:
        # Align to the MXU/native tile: prefer 256, then 128, then sublane (8).
        for align in (256, 128, 8):
            if bm >= align:
                bm = (bm // align) * align
                break
    while bm > 8 and weight_bytes + act_bytes(bm) > budget_bytes:
        bm = max(8, (bm // 2 // 8) * 8)
    bm = max(bm, 1)
    return bm, weight_bytes + act_bytes(bm)


def _const_spec(shape, single_buffer):
    """Grid-invariant BlockSpec; single-buffered when supported."""
    index_map = lambda i: (0,) * len(shape)
    if single_buffer:
        try:
            return pl.BlockSpec(shape, index_map, pipeline_mode=pl.Buffered(1))
        except TypeError:
            pass  # older Pallas without pipeline_mode kwarg -> default double-buffer
    return pl.BlockSpec(shape, index_map)


def residual_block_forward(x, params, *, bm=None, mxu_dtype=jnp.bfloat16,
                           single_buffer_weights=True):
    """x: (B, C) float32. params: dict of weights (see init_params)."""
    B, C = x.shape
    w1, b1, w2, b2 = fold_params(params, mxu_dtype)

    # Lane-align channels: pad to a multiple of 128 (zero pad -> padded cols stay zero
    # through both Linear stages, the residual, and ReLU, then get sliced off).
    Cp = max(128, ((C + 127) // 128) * 128)
    if Cp != C:
        pc = Cp - C
        w1 = jnp.pad(w1, ((0, pc), (0, pc)))
        w2 = jnp.pad(w2, ((0, pc), (0, pc)))
        b1 = jnp.pad(b1, ((0, 0), (0, pc)))
        b2 = jnp.pad(b2, ((0, 0), (0, pc)))
        x_in = jnp.pad(x, ((0, 0), (0, pc)))
    else:
        x_in = x

    itemsize_w = jnp.dtype(mxu_dtype).itemsize
    vmem_cap, budget, is_v7x = _vmem_plan()
    if bm is None:
        bm, vmem_need = _choose_bm(B, Cp, budget_bytes=budget,
                                   w_itemsize=itemsize_w, is_v7x=is_v7x)
    else:
        vmem_need = 2 * Cp * Cp * itemsize_w + bm * Cp * 4 * 6

    grid = (pl.cdiv(B, bm),)

    x_spec = pl.BlockSpec((bm, Cp), lambda i: (i, 0))
    w_spec = _const_spec((Cp, Cp), single_buffer_weights)   # grid-invariant weights
    b_spec = _const_spec((1, Cp), single_buffer_weights)    # grid-invariant folded bias

    cost = pl.CostEstimate(
        flops=4 * B * Cp * Cp,                               # two (B,Cp)x(Cp,Cp) matmuls
        transcendentals=0,
        bytes_accessed=2 * B * Cp * 4 + 2 * Cp * Cp * itemsize_w + 2 * Cp * 4,
    )
    vmem_limit = int(min(vmem_cap, max(32 * 1024 * 1024, int(1.25 * vmem_need))))

    out_p = pl.pallas_call(
        _residual_block_kernel,
        out_shape=jax.ShapeDtypeStruct((B, Cp), x.dtype),
        grid=grid,
        in_specs=[x_spec, w_spec, b_spec, w_spec, b_spec],
        out_specs=x_spec,
        compiler_params=pltpu.CompilerParams(
            dimension_semantics=("parallel",),
            vmem_limit_bytes=vmem_limit,
        ),
        cost_estimate=cost,
    )(x_in, w1, b1, w2, b2)

    return out_p[:, :C] if Cp != C else out_p


# --------------------------------------------------------------------------------------
# Parameter init + references
# --------------------------------------------------------------------------------------
def init_params(key, channels):
    """Deterministic synthetic init mimicking the PyTorch module's parameter shapes."""
    k1, k2, k3, k4, k5, k6 = jax.random.split(key, 6)
    bound = 1.0 / jnp.sqrt(channels)
    return {
        # nn.Linear(channels, channels): weight (out, in), bias (out,)
        "w1": jax.random.uniform(k1, (channels, channels), jnp.float32, -bound, bound),
        "b1": jax.random.uniform(k2, (channels,), jnp.float32, -bound, bound),
        "w2": jax.random.uniform(k3, (channels, channels), jnp.float32, -bound, bound),
        "b2": jax.random.uniform(k4, (channels,), jnp.float32, -bound, bound),
        # nn.BatchNorm1d running stats / affine (perturbed so BN math is exercised)
        "gamma1": jnp.ones((channels,), jnp.float32),
        "beta1": jnp.zeros((channels,), jnp.float32),
        "mean1": 0.05 * jax.random.normal(k5, (channels,), jnp.float32),
        "var1": jnp.ones((channels,), jnp.float32) + 0.1,
        "gamma2": jnp.ones((channels,), jnp.float32),
        "beta2": jnp.zeros((channels,), jnp.float32),
        "mean2": 0.05 * jax.random.normal(k6, (channels,), jnp.float32),
        "var2": jnp.ones((channels,), jnp.float32) + 0.2,
    }


def reference_forward(x, p):
    """Pure-JAX f32 reference matching the PyTorch module in eval mode."""
    h = x @ p["w1"].T + p["b1"]
    h = (h - p["mean1"]) / jnp.sqrt(p["var1"] + EPS) * p["gamma1"] + p["beta1"]
    h = jnp.maximum(h, 0.0)
    h = h @ p["w2"].T + p["b2"]
    h = (h - p["mean2"]) / jnp.sqrt(p["var2"] + EPS) * p["gamma2"] + p["beta2"]
    return jnp.maximum(x + h, 0.0)


def reference_forward_folded(x, w1, b1, w2, b2):
    """Reference with the same folded/bf16 numerics as the kernel (tight comparison)."""
    h = jnp.dot(x.astype(w1.dtype), w1, preferred_element_type=jnp.float32) + b1
    h = jnp.maximum(h, 0.0)
    h = jnp.dot(h.astype(w2.dtype), w2, preferred_element_type=jnp.float32) + b2
    return jnp.maximum(x + h, 0.0)


# --------------------------------------------------------------------------------------
if __name__ == "__main__":
    B, C = 16, 32  # batch, channels (feature dim)
    key = jax.random.PRNGKey(0)
    kx, kp = jax.random.split(key)

    x = jax.random.normal(kx, (B, C), jnp.float32)
    params = init_params(kp, C)

    try:
        fwd = jax.jit(residual_block_forward)
        out = jax.block_until_ready(fwd(x, params))
    except Exception:
        # Fallback: this Pallas build rejects single-buffered (Buffered(1)) constant inputs.
        fwd = jax.jit(functools.partial(residual_block_forward,
                                        single_buffer_weights=False))
        out = jax.block_until_ready(fwd(x, params))
    assert out.shape == (B, C)

    # Tight check vs a reference that uses the identical folded-bf16 numerics.
    w1, b1, w2, b2 = fold_params(params)
    ref_matched = reference_forward_folded(x, w1, b1, w2, b2)
    assert jnp.allclose(out, ref_matched, atol=2e-3, rtol=2e-3), "mismatch vs folded reference"

    # Semantic check vs the full-precision unfolded module (bf16 MXU rounding allowed).
    ref_full = reference_forward(x, params)
    assert jnp.allclose(out, ref_full, atol=5e-2, rtol=5e-2), "mismatch vs f32 module reference"

    print("KERNEL_OK")
</pallas_src>

<mosaic_0001>
module attributes {stable_mosaic.version = 11 : i64} {
  func.func @_residual_block_kernel(%arg0: i32, %arg1: memref<16x128xf32, #tpu.memory_space<vmem>>, %arg2: memref<128x128xbf16, #tpu.memory_space<vmem>>, %arg3: memref<1x128xf32, #tpu.memory_space<vmem>>, %arg4: memref<128x128xbf16, #tpu.memory_space<vmem>>, %arg5: memref<1x128xf32, #tpu.memory_space<vmem>>, %arg6: memref<16x128xf32, #tpu.memory_space<vmem>>) attributes {dimension_semantics = [#tpu.dimension_semantics<parallel>], iteration_bounds = array<i64: 1>, scalar_prefetch = 0 : i64, scratch_operands = 0 : i64, tpu.core_type = #tpu.core_type<tc>, window_params = [{transform_indices = @transform_0, window_bounds = array<i64: 16, 128>}, {pipeline_mode = #tpu.pipeline_mode<synchronous>, transform_indices = @transform_1, window_bounds = array<i64: 128, 128>}, {pipeline_mode = #tpu.pipeline_mode<synchronous>, transform_indices = @transform_2, window_bounds = array<i64: 1, 128>}, {pipeline_mode = #tpu.pipeline_mode<synchronous>, transform_indices = @transform_3, window_bounds = array<i64: 128, 128>}, {pipeline_mode = #tpu.pipeline_mode<synchronous>, transform_indices = @transform_4, window_bounds = array<i64: 1, 128>}, {transform_indices = @transform_5, window_bounds = array<i64: 16, 128>}]} {
    %c0 = arith.constant 0 : index
    %c0_0 = arith.constant 0 : index
    %0 = vector.load %arg1[%c0, %c0_0] : memref<16x128xf32, #tpu.memory_space<vmem>>, vector<16x128xf32>
    %1 = arith.truncf %0 : vector<16x128xf32> to vector<16x128xbf16>
    %c0_1 = arith.constant 0 : index
    %c0_2 = arith.constant 0 : index
    %2 = vector.load %arg2[%c0_1, %c0_2] : memref<128x128xbf16, #tpu.memory_space<vmem>>, vector<128x128xbf16>
    %cst = arith.constant dense<0.000000e+00> : vector<16x128xf32>
    %3 = tpu.matmul %1, %2, %cst {dimension_numbers = #tpu.dot_dimension_numbers<[1], [0], [0], [1], [0, 0, 1, 1], [], []>} : vector<16x128xbf16>, vector<128x128xbf16>, vector<16x128xf32> -> vector<16x128xf32>
    %c0_3 = arith.constant 0 : index
    %c0_4 = arith.constant 0 : index
    %4 = vector.load %arg3[%c0_3, %c0_4] : memref<1x128xf32, #tpu.memory_space<vmem>>, vector<1x128xf32>
    %5 = vector.broadcast %4 : vector<1x128xf32> to vector<16x128xf32>
    %6 = arith.addf %3, %5 : vector<16x128xf32>
    %cst_5 = arith.constant 0.000000e+00 : f32
    %7 = vector.broadcast %cst_5 : f32 to vector<16x128xf32>
    %8 = arith.maximumf %6, %7 : vector<16x128xf32>
    %9 = arith.truncf %8 : vector<16x128xf32> to vector<16x128xbf16>
    %c0_6 = arith.constant 0 : index
    %c0_7 = arith.constant 0 : index
    %10 = vector.load %arg4[%c0_6, %c0_7] : memref<128x128xbf16, #tpu.memory_space<vmem>>, vector<128x128xbf16>
    %cst_8 = arith.constant dense<0.000000e+00> : vector<16x128xf32>
    %11 = tpu.matmul %9, %10, %cst_8 {dimension_numbers = #tpu.dot_dimension_numbers<[1], [0], [0], [1], [0, 0, 1, 1], [], []>} : vector<16x128xbf16>, vector<128x128xbf16>, vector<16x128xf32> -> vector<16x128xf32>
    %c0_9 = arith.constant 0 : index
    %c0_10 = arith.constant 0 : index
    %12 = vector.load %arg5[%c0_9, %c0_10] : memref<1x128xf32, #tpu.memory_space<vmem>>, vector<1x128xf32>
    %13 = vector.broadcast %12 : vector<1x128xf32> to vector<16x128xf32>
    %14 = arith.addf %11, %13 : vector<16x128xf32>
    %c0_11 = arith.constant 0 : index
    %c0_12 = arith.constant 0 : index
    %15 = vector.load %arg1[%c0_11, %c0_12] : memref<16x128xf32, #tpu.memory_space<vmem>>, vector<16x128xf32>
    %16 = arith.addf %15, %14 : vector<16x128xf32>
    %cst_13 = arith.constant 0.000000e+00 : f32
    %17 = vector.broadcast %cst_13 : f32 to vector<16x128xf32>
    %18 = arith.maximumf %16, %17 : vector<16x128xf32>
    %c0_14 = arith.constant 0 : index
    %c0_15 = arith.constant 0 : index
    %19 = vector.load %arg6[%c0_14, %c0_15] : memref<16x128xf32, #tpu.memory_space<vmem>>, vector<16x128xf32>
    tpu.vector_store %arg6[%c0_14, %c0_15], %18 {strides = array<i32>} : memref<16x128xf32, #tpu.memory_space<vmem>>, vector<16x128xf32>,
    return
  }
  func.func @transform_0(%arg0: i32) -> (i32, i32) {
    %c0_i32 = arith.constant 0 : i32
    %c0_i32_0 = arith.constant 0 : i32
    return %arg0, %c0_i32 : i32, i32
  }
  func.func @transform_1(%arg0: i32) -> (i32, i32) {
    %c0_i32 = arith.constant 0 : i32
    %c0_i32_0 = arith.constant 0 : i32
    %c0_i32_1 = arith.constant 0 : i32
    return %c0_i32, %c0_i32_0 : i32, i32
  }
  func.func @transform_2(%arg0: i32) -> (i32, i32) {
    %c0_i32 = arith.constant 0 : i32
    %c0_i32_0 = arith.constant 0 : i32
    %c0_i32_1 = arith.constant 0 : i32
    return %c0_i32, %c0_i32_0 : i32, i32
  }
  func.func @transform_3(%arg0: i32) -> (i32, i32) {
    %c0_i32 = arith.constant 0 : i32
    %c0_i32_0 = arith.constant 0 : i32
    %c0_i32_1 = arith.constant 0 : i32
    return %c0_i32, %c0_i32_0 : i32, i32
  }
  func.func @transform_4(%arg0: i32) -> (i32, i32) {
    %c0_i32 = arith.constant 0 : i32
    %c0_i32_0 = arith.constant 0 : i32
    %c0_i32_1 = arith.constant 0 : i32
    return %c0_i32, %c0_i32_0 : i32, i32
  }
  func.func @transform_5(%arg0: i32) -> (i32, i32) {
    %c0_i32 = arith.constant 0 : i32
    %c0_i32_0 = arith.constant 0 : i32
    return %arg0, %c0_i32 : i32, i32
  }
}

module attributes {stable_mosaic.version = 11 : i64} {
  func.func @_residual_block_kernel(%arg0: i32, %arg1: memref<16x128xf32, #tpu.memory_space<vmem>>, %arg2: memref<128x128xbf16, #tpu.memory_space<vmem>>, %arg3: memref<1x128xf32, #tpu.memory_space<vmem>>, %arg4: memref<128x128xbf16, #tpu.memory_space<vmem>>, %arg5: memref<1x128xf32, #tpu.memory_space<vmem>>, %arg6: memref<16x128xf32, #tpu.memory_space<vmem>>) attributes {dimension_semantics = [#tpu.dimension_semantics<parallel>], iteration_bounds = array<i64: 1>, scalar_prefetch = 0 : i64, scratch_operands = 0 : i64, tpu.core_type = #tpu.core_type<tc>, window_params = [{transform_indices = @transform_0, window_bounds = array<i64: 16, 128>}, {pipeline_mode = #tpu.pipeline_mode<synchronous>, transform_indices = @transform_1, window_bounds = array<i64: 128, 128>}, {pipeline_mode = #tpu.pipeline_mode<synchronous>, transform_indices = @transform_2, window_bounds = array<i64: 1, 128>}, {pipeline_mode = #tpu.pipeline_mode<synchronous>, transform_indices = @transform_3, window_bounds = array<i64: 128, 128>}, {pipeline_mode = #tpu.pipeline_mode<synchronous>, transform_indices = @transform_4, window_bounds = array<i64: 1, 128>}, {transform_indices = @transform_5, window_bounds = array<i64: 16, 128>}]} {
    %c0 = arith.constant 0 : index
    %c0_0 = arith.constant 0 : index
    %0 = vector.load %arg1[%c0, %c0_0] : memref<16x128xf32, #tpu.memory_space<vmem>>, vector<16x128xf32>
    %1 = arith.truncf %0 : vector<16x128xf32> to vector<16x128xbf16>
    %c0_1 = arith.constant 0 : index
    %c0_2 = arith.constant 0 : index
    %2 = vector.load %arg2[%c0_1, %c0_2] : memref<128x128xbf16, #tpu.memory_space<vmem>>, vector<128x128xbf16>
    %cst = arith.constant dense<0.000000e+00> : vector<16x128xf32>
    %3 = tpu.matmul %1, %2, %cst {dimension_numbers = #tpu.dot_dimension_numbers<[1], [0], [0], [1], [0, 0, 1, 1], [], []>} : vector<16x128xbf16>, vector<128x128xbf16>, vector<16x128xf32> -> vector<16x128xf32>
    %c0_3 = arith.constant 0 : index
    %c0_4 = arith.constant 0 : index
    %4 = vector.load %arg3[%c0_3, %c0_4] : memref<1x128xf32, #tpu.memory_space<vmem>>, vector<1x128xf32>
    %5 = vector.broadcast %4 : vector<1x128xf32> to vector<16x128xf32>
    %6 = arith.addf %3, %5 : vector<16x128xf32>
    %cst_5 = arith.constant 0.000000e+00 : f32
    %7 = vector.broadcast %cst_5 : f32 to vector<16x128xf32>
    %8 = arith.maximumf %6, %7 : vector<16x128xf32>
    %9 = arith.truncf %8 : vector<16x128xf32> to vector<16x128xbf16>
    %c0_6 = arith.constant 0 : index
    %c0_7 = arith.constant 0 : index
    %10 = vector.load %arg4[%c0_6, %c0_7] : memref<128x128xbf16, #tpu.memory_space<vmem>>, vector<128x128xbf16>
    %cst_8 = arith.constant dense<0.000000e+00> : vector<16x128xf32>
    %11 = tpu.matmul %9, %10, %cst_8 {dimension_numbers = #tpu.dot_dimension_numbers<[1], [0], [0], [1], [0, 0, 1, 1], [], []>} : vector<16x128xbf16>, vector<128x128xbf16>, vector<16x128xf32> -> vector<16x128xf32>
    %c0_9 = arith.constant 0 : index
    %c0_10 = arith.constant 0 : index
    %12 = vector.load %arg5[%c0_9, %c0_10] : memref<1x128xf32, #tpu.memory_space<vmem>>, vector<1x128xf32>
    %13 = vector.broadcast %12 : vector<1x128xf32> to vector<16x128xf32>
    %14 = arith.addf %11, %13 : vector<16x128xf32>
    %c0_11 = arith.constant 0 : index
    %c0_12 = arith.constant 0 : index
    %15 = vector.load %arg1[%c0_11, %c0_12] : memref<16x128xf32, #tpu.memory_space<vmem>>, vector<16x128xf32>
    %16 = arith.addf %15, %14 : vector<16x128xf32>
    %cst_13 = arith.constant 0.000000e+00 : f32
    %17 = vector.broadcast %cst_13 : f32 to vector<16x128xf32>
    %18 = arith.maximumf %16, %17 : vector<16x128xf32>
    %c0_14 = arith.constant 0 : index
    %c0_15 = arith.constant 0 : index
    %19 = vector.load %arg6[%c0_14, %c0_15] : memref<16x128xf32, #tpu.memory_space<vmem>>, vector<16x128xf32>
    tpu.vector_store %arg6[%c0_14, %c0_15], %18 {strides = array<i32>} : memref<16x128xf32, #tpu.memory_space<vmem>>, vector<16x128xf32>,
    return
  }
  func.func @transform_0(%arg0: i32) -> (i32, i32) {
    %c0_i32 = arith.constant 0 : i32
    %c0_i32_0 = arith.constant 0 : i32
    return %arg0, %c0_i32 : i32, i32
  }
  func.func @transform_1(%arg0: i32) -> (i32, i32) {
    %c0_i32 = arith.constant 0 : i32
    %c0_i32_0 = arith.constant 0 : i32
    %c0_i32_1 = arith.constant 0 : i32
    return %c0_i32, %c0_i32_0 : i32, i32
  }
  func.func @transform_2(%arg0: i32) -> (i32, i32) {
    %c0_i32 = arith.constant 0 : i32
    %c0_i32_0 = arith.constant 0 : i32
    %c0_i32_1 = arith.constant 0 : i32
    return %c0_i32, %c0_i32_0 : i32, i32
  }
  func.func @transform_3(%arg0: i32) -> (i32, i32) {
    %c0_i32 = arith.constant 0 : i32
    %c0_i32_0 = arith.constant 0 : i32
    %c0_i32_1 = arith.constant 0 : i32
    return %c0_i32, %c0_i32_0 : i32, i32
  }
  func.func @transform_4(%arg0: i32) -> (i32, i32) {
    %c0_i32 = arith.constant 0 : i32
    %c0_i32_0 = arith.constant 0 : i32
    %c0_i32_1 = arith.constant 0 : i32
    return %c0_i32, %c0_i32_0 : i32, i32
  }
  func.func @transform_5(%arg0: i32) -> (i32, i32) {
    %c0_i32 = arith.constant 0 : i32
    %c0_i32_0 = arith.constant 0 : i32
    return %arg0, %c0_i32 : i32, i32
  }
}

</mosaic_0001>

<bundles_post_ra>
// kernel: residual_block_forward.1
= control target key start
LH: loop header
LB: loop body
LE: loop exit
PB: predicated region body
PF: predicated region fallthrough
CT: control target
= control target key end

     0   :  { %v393_v1 = vmov 0.0   ;;  %vm394_vm0 = vmmov 0   ;;  %s491_s0 = inlined_call_operand.vmem [shape: f32[16,128], index: 0, kind: input, shape index: {}]   ;;  %s492_s1 = inlined_call_operand.vmem [shape: bf16[128,128], index: 1, kind: input, shape index: {}]   ;;  %s493_s2 = inlined_call_operand.vmem [shape: f32[1,128], index: 2, kind: input, shape index: {}]   ;;  %s494_s3 = inlined_call_operand.vmem [shape: bf16[128,128], index: 3, kind: input, shape index: {}]   ;;  %s495_s4 = inlined_call_operand.vmem [shape: f32[1,128], index: 4, kind: input, shape index: {}]   ;;  %s496_s5 = inlined_call_operand.hbm [shape: f32[16,128], index: 5, kind: output, shape index: {}]  }
   0x1   :  { %v355_v0 = vld [vmem:[%s492_s1 + $0x38] sm:$0xff]   ;;  %310 = vmatprep.subr.bf16.mxu0 %v393_v1  ;;  %330 = vmatprep.subr.bf16.mxu1 %v393_v1  ;;  %v356_v2 = vld [vmem:[%s492_s1 + $0x30] sm:$0xff]   ;;  %v357_v3 = vld [vmem:[%s492_s1 + $0x28] sm:$0xff]  }
   0x2   :  { %311 = vmatpush3.bf16.msra.mxu0 %v355_v0  ;;  %326 = vmatprep.mubr.msk.bf16.mxu0 %vm394_vm0, %v393_v1  ;;  %v363_v4 = vld [vmem:[%s494_s3 + $0x38] sm:$0xff]   ;;  %v358_v5 = vld [vmem:[%s492_s1 + $0x20] sm:$0xff]   ;;  %v364_v6 = vld [vmem:[%s494_s3 + $0x30] sm:$0xff]  }
   0x3   :  { %312 = vmatprep.subr.bf16.mxu0 %v393_v1  ;;  %346 = vmatprep.mubr.msk.bf16.mxu1 %vm394_vm0, %v393_v1  ;;  %v359_v7 = vld [vmem:[%s492_s1 + $0x18] sm:$0xff]   ;;  %v365_v8 = vld [vmem:[%s494_s3 + $0x28] sm:$0xff]  }
   0x4   :  { %331 = vmatpush3.bf16.msra.mxu1 %v363_v4 }
   0x5   :  { %332 = vmatprep.subr.bf16.mxu1 %v393_v1 }
   0x6   :  { %313 = vmatpush3.bf16.msra.mxu0 %v356_v2 }
   0x7   :  { %314 = vmatprep.subr.bf16.mxu0 %v393_v1 }
   0x8   :  { %333 = vmatpush3.bf16.msra.mxu1 %v364_v6 }
   0x9   :  { %334 = vmatprep.subr.bf16.mxu1 %v393_v1 }
   0xa   :  { %315 = vmatpush3.bf16.msra.mxu0 %v357_v3 }
   0xb   :  { %316 = vmatprep.subr.bf16.mxu0 %v393_v1 }
   0xe   :  { %317 = vmatpush3.bf16.msra.mxu0 %v358_v5 }
   0xf   :  { %318 = vmatprep.subr.bf16.mxu0 %v393_v1 }
  0x10   :  { %10 = vsyncpa [#allocation3], 0  ;;  %v360_v9 = vld [vmem:[%s492_s1 + $0x10] sm:$0xff]   ;;  %335 = vmatpush3.bf16.msra.mxu1 %v365_v8  ;;  %v366_v10 = vld [vmem:[%s494_s3 + $0x20] sm:$0xff]  }
  0x11   :  { %336 = vmatprep.subr.bf16.mxu1 %v393_v1  ;;  %v361_v11 = vld [vmem:[%s492_s1 + $0x8] sm:$0xff]   ;;  %v367_v12 = vld [vmem:[%s494_s3 + $0x18] sm:$0xff]   ;;  %v362_v13 = vld [vmem:[%s492_s1] sm:$0xff]  }
  0x12   :  { %319 = vmatpush3.bf16.msra.mxu0 %v359_v7  ;;  %v22_v14 = vld [vmem:[%s491_s0] sm:$0xff]  ;;  %v23_v15 = vld [vmem:[%s491_s0 + $0x8] sm:$0xff]  ;;  %v368_v17 = vld [vmem:[%s494_s3 + $0x10] sm:$0xff]  }
  0x13   :  { %320 = vmatprep.subr.bf16.mxu0 %v393_v1  ;;  %v24_v16 = vpack.c.bf16 %v23_v15, %v22_v14  ;;  %v369_v18 = vld [vmem:[%s494_s3 + $0x8] sm:$0xff]   ;;  %v370_v19 = vld [vmem:[%s494_s3] sm:$0xff]  }
  0x14   :  { %337 = vmatpush3.bf16.msra.mxu1 %v366_v10  ;;  %v274_v20 = vld [vmem:[%s493_s2] ss:$0 sm:$0xff]  ;;  %s395_s2 = smov [#allocation2]  }
  0x15   :  { %338 = vmatprep.subr.bf16.mxu1 %v393_v1  ;;  %v283_v30 = vld [vmem:[%s495_s4] ss:$0 sm:$0xff]  ;;  %s263_s3 = sshll.u32 %s395_s2, 4  ;;  %s264_s3 = int_to_ptr.vmem [resolvable:$true] %s263_s3 }
  0x16   :  { %321 = vmatpush3.bf16.msra.mxu0 %v360_v9  ;;  %s371_s6 = scalar_lea.vmem %s264_s3, 256  ;;  %p376_p1 = scmp.lt.s32.totalorder %s264_s3, %s264_s3 }
  0x17   :  { %322 = vmatprep.subr.bf16.mxu0 %v393_v1  ;;  %p372_p0 = scmp.ne.s32.totalorder %s264_s3, %s371_s6  ;;  %p377_p2 = scmp.lt.s32.totalorder %s371_s6, %s371_s6 }
  0x18   :  { %339 = vmatpush3.bf16.msra.mxu1 %v367_v12 }
  0x19   :  { %340 = vmatprep.subr.bf16.mxu1 %v393_v1  ;;  %p378_p3 = por %p377_p2, %p376_p1 }
  0x1a   :  { %323 = vmatpush3.bf16.msra.mxu0 %v361_v11 }
  0x1b   :  { %324 = vmatprep.subr.bf16.mxu0 %v393_v1  ;;  %p379_p4 = pnand %p378_p3, %p372_p0 }
  0x1c   :  { %341 = vmatpush3.bf16.msra.mxu1 %v368_v17 }
  0x1d   :  { %342 = vmatprep.subr.bf16.mxu1 %v393_v1 }
  0x1e   :  { %325 = vmatpush3.bf16.msra.mxu0 %v362_v13 }
  0x20   :  { %343 = vmatpush3.bf16.msra.mxu1 %v369_v18 }
  0x21   :  { %327 = vmatmul.mubr.bf16.vlgmr.msra.gmra.mxu0 %v24_v16  ;;  %344 = vmatprep.subr.bf16.mxu1 %v393_v1 }
  0x24   :  { %345 = vmatpush3.bf16.msra.mxu1 %v370_v19 }
  0xe1   :  { %v130_v21 = vpop.f32.mrf.mxu0 }
  0xe2   :  { %v131_v23 = vadd.f32 %v274_v20, %v130_v21 }
  0xe3   :  { %v328_v22 = vpop.f32.mrf.mxu0 }
  0xe4   :  { %v137_v27 = vmax.f32 %v131_v23, 0.0 }
  0xe5   :  { %v133_v24 = vpop.f32.mrf.mxu0 }
  0xe6   :  { %v134_v25 = vadd.f32 %v274_v20, %v133_v24 }
  0xe7   :  { %v329_v26 = vpop.f32.mrf.mxu0 }
  0xe8   :  { %v138_v28 = vmax.f32 %v134_v25, 0.0 }
  0xea   :  { %v139_v29 = vpack.c.bf16 %v138_v28, %v137_v27 }
  0xec   :  { %347 = vmatmul.mubr.bf16.vlgmr.msra.gmra.mxu1 %v139_v29 }
 0x1ac   :  { %v245_v31 = vpop.f32.mrf.mxu1 }
 0x1ad   :  { %v246_v32 = vadd.f32 %v283_v30, %v245_v31 }
 0x1ae   :  { %v348_v33 = vpop.f32.mrf.mxu1 }
 0x1af   :  { %v252_v34 = vadd.f32 %v246_v32, %v22_v14 }
 0x1b0   :  { %v248_v35 = vpop.f32.mrf.mxu1 }
 0x1b1   :  { %v254_v36 = vmax.f32 %v252_v34, 0.0  ;;  %v249_v37 = vadd.f32 %v283_v30, %v248_v35 }
 0x1b2   :  { %v349_v38 = vpop.f32.mrf.mxu1 }
 0x1b3   :  { %256 = vst [vmem:[#allocation2] sm:$0xff] %v254_v36  ;;  %v253_v39 = vadd.f32 %v249_v37, %v23_v15 }
 0x1b5   :  { %v255_v40 = vmax.f32 %v253_v39, 0.0 }
 0x1b7   :  { %257 = vst [vmem:[#allocation2 + $0x8] sm:$0xff] %v255_v40 }
 0x1b8   :  { %382 = shalt.err (!%p379_p4)
}
 0x1b9   :  { %s396_s4 = smov 128   ;;  %s397_s7 = smov 8  }
 0x1ba   :  { %269 = dma.vmem_to_hbm [thread:$0]  %s264_s3, 256, %s496_s5, [#allocation3], %s396_s4, %s396_s4, %s397_s7  }
 0x1bb   :  { %391 = dma.done.wait [#allocation3], 256  }
 0x1bc   :  { %392 = vsyncadd [#allocation3], 4294967040 }
 0x1bd   :  { %273 = vsyncpa [#allocation3], 1 }

// kernel: residual_block_forward.1
= control target key start
LH: loop header
LB: loop body
LE: loop exit
PB: predicated region body
PF: predicated region fallthrough
CT: control target
= control target key end

     0   :  { %v393_v1 = vmov 0.0   ;;  %vm394_vm0 = vmmov 0   ;;  %s491_s0 = inlined_call_operand.vmem [shape: f32[16,128], index: 0, kind: input, shape index: {}]   ;;  %s492_s1 = inlined_call_operand.vmem [shape: bf16[128,128], index: 1, kind: input, shape index: {}]   ;;  %s493_s2 = inlined_call_operand.vmem [shape: f32[1,128], index: 2, kind: input, shape index: {}]   ;;  %s494_s3 = inlined_call_operand.vmem [shape: bf16[128,128], index: 3, kind: input, shape index: {}]   ;;  %s495_s4 = inlined_call_operand.vmem [shape: f32[1,128], index: 4, kind: input, shape index: {}]   ;;  %s496_s5 = inlined_call_operand.hbm [shape: f32[16,128], index: 5, kind: output, shape index: {}]  }
   0x1   :  { %v355_v0 = vld [vmem:[%s492_s1 + $0x38] sm:$0xff]   ;;  %310 = vmatprep.subr.bf16.mxu0 %v393_v1  ;;  %330 = vmatprep.subr.bf16.mxu1 %v393_v1  ;;  %v356_v2 = vld [vmem:[%s492_s1 + $0x30] sm:$0xff]   ;;  %v357_v3 = vld [vmem:[%s492_s1 + $0x28] sm:$0xff]  }
   0x2   :  { %311 = vmatpush3.bf16.msra.mxu0 %v355_v0  ;;  %326 = vmatprep.mubr.msk.bf16.mxu0 %vm394_vm0, %v393_v1  ;;  %v363_v4 = vld [vmem:[%s494_s3 + $0x38] sm:$0xff]   ;;  %v358_v5 = vld [vmem:[%s492_s1 + $0x20] sm:$0xff]   ;;  %v364_v6 = vld [vmem:[%s494_s3 + $0x30] sm:$0xff]  }
   0x3   :  { %312 = vmatprep.subr.bf16.mxu0 %v393_v1  ;;  %346 = vmatprep.mubr.msk.bf16.mxu1 %vm394_vm0, %v393_v1  ;;  %v359_v7 = vld [vmem:[%s492_s1 + $0x18] sm:$0xff]   ;;  %v365_v8 = vld [vmem:[%s494_s3 + $0x28] sm:$0xff]  }
   0x4   :  { %331 = vmatpush3.bf16.msra.mxu1 %v363_v4 }
   0x5   :  { %332 = vmatprep.subr.bf16.mxu1 %v393_v1 }
   0x6   :  { %313 = vmatpush3.bf16.msra.mxu0 %v356_v2 }
   0x7   :  { %314 = vmatprep.subr.bf16.mxu0 %v393_v1 }
   0x8   :  { %333 = vmatpush3.bf16.msra.mxu1 %v364_v6 }
   0x9   :  { %334 = vmatprep.subr.bf16.mxu1 %v393_v1 }
   0xa   :  { %315 = vmatpush3.bf16.msra.mxu0 %v357_v3 }
   0xb   :  { %316 = vmatprep.subr.bf16.mxu0 %v393_v1 }
   0xe   :  { %317 = vmatpush3.bf16.msra.mxu0 %v358_v5 }
   0xf   :  { %318 = vmatprep.subr.bf16.mxu0 %v393_v1 }
  0x10   :  { %10 = vsyncpa [#allocation3], 0  ;;  %v360_v9 = vld [vmem:[%s492_s1 + $0x10] sm:$0xff]   ;;  %335 = vmatpush3.bf16.msra.mxu1 %v365_v8  ;;  %v366_v10 = vld [vmem:[%s494_s3 + $0x20] sm:$0xff]  }
  0x11   :  { %336 = vmatprep.subr.bf16.mxu1 %v393_v1  ;;  %v361_v11 = vld [vmem:[%s492_s1 + $0x8] sm:$0xff]   ;;  %v367_v12 = vld [vmem:[%s494_s3 + $0x18] sm:$0xff]   ;;  %v362_v13 = vld [vmem:[%s492_s1] sm:$0xff]  }
  0x12   :  { %319 = vmatpush3.bf16.msra.mxu0 %v359_v7  ;;  %v22_v14 = vld [vmem:[%s491_s0] sm:$0xff]  ;;  %v23_v15 = vld [vmem:[%s491_s0 + $0x8] sm:$0xff]  ;;  %v368_v17 = vld [vmem:[%s494_s3 + $0x10] sm:$0xff]  }
  0x13   :  { %320 = vmatprep.subr.bf16.mxu0 %v393_v1  ;;  %v24_v16 = vpack.c.bf16 %v23_v15, %v22_v14  ;;  %v369_v18 = vld [vmem:[%s494_s3 + $0x8] sm:$0xff]   ;;  %v370_v19 = vld [vmem:[%s494_s3] sm:$0xff]  }
  0x14   :  { %337 = vmatpush3.bf16.msra.mxu1 %v366_v10  ;;  %v274_v20 = vld [vmem:[%s493_s2] ss:$0 sm:$0xff]  ;;  %s395_s2 = smov [#allocation2]  }
  0x15   :  { %338 = vmatprep.subr.bf16.mxu1 %v393_v1  ;;  %v283_v30 = vld [vmem:[%s495_s4] ss:$0 sm:$0xff]  ;;  %s263_s3 = sshll.u32 %s395_s2, 4  ;;  %s264_s3 = int_to_ptr.vmem [resolvable:$true] %s263_s3 }
  0x16   :  { %321 = vmatpush3.bf16.msra.mxu0 %v360_v9  ;;  %s371_s6 = scalar_lea.vmem %s264_s3, 256  ;;  %p376_p1 = scmp.lt.s32.totalorder %s264_s3, %s264_s3 }
  0x17   :  { %322 = vmatprep.subr.bf16.mxu0 %v393_v1  ;;  %p372_p0 = scmp.ne.s32.totalorder %s264_s3, %s371_s6  ;;  %p377_p2 = scmp.lt.s32.totalorder %s371_s6, %s371_s6 }
  0x18   :  { %339 = vmatpush3.bf16.msra.mxu1 %v367_v12 }
  0x19   :  { %340 = vmatprep.subr.bf16.mxu1 %v393_v1  ;;  %p378_p3 = por %p377_p2, %p376_p1 }
  0x1a   :  { %323 = vmatpush3.bf16.msra.mxu0 %v361_v11 }
  0x1b   :  { %324 = vmatprep.subr.bf16.mxu0 %v393_v1  ;;  %p379_p4 = pnand %p378_p3, %p372_p0 }
  0x1c   :  { %341 = vmatpush3.bf16.msra.mxu1 %v368_v17 }
  0x1d   :  { %342 = vmatprep.subr.bf16.mxu1 %v393_v1 }
  0x1e   :  { %325 = vmatpush3.bf16.msra.mxu0 %v362_v13 }
  0x20   :  { %343 = vmatpush3.bf16.msra.mxu1 %v369_v18 }
  0x21   :  { %327 = vmatmul.mubr.bf16.vlgmr.msra.gmra.mxu0 %v24_v16  ;;  %344 = vmatprep.subr.bf16.mxu1 %v393_v1 }
  0x24   :  { %345 = vmatpush3.bf16.msra.mxu1 %v370_v19 }
  0xe1   :  { %v130_v21 = vpop.f32.mrf.mxu0 }
  0xe2   :  { %v131_v23 = vadd.f32 %v274_v20, %v130_v21 }
  0xe3   :  { %v328_v22 = vpop.f32.mrf.mxu0 }
  0xe4   :  { %v137_v27 = vmax.f32 %v131_v23, 0.0 }
  0xe5   :  { %v133_v24 = vpop.f32.mrf.mxu0 }
  0xe6   :  { %v134_v25 = vadd.f32 %v274_v20, %v133_v24 }
  0xe7   :  { %v329_v26 = vpop.f32.mrf.mxu0 }
  0xe8   :  { %v138_v28 = vmax.f32 %v134_v25, 0.0 }
  0xea   :  { %v139_v29 = vpack.c.bf16 %v138_v28, %v137_v27 }
  0xec   :  { %347 = vmatmul.mubr.bf16.vlgmr.msra.gmra.mxu1 %v139_v29 }
 0x1ac   :  { %v245_v31 = vpop.f32.mrf.mxu1 }
 0x1ad   :  { %v246_v32 = vadd.f32 %v283_v30, %v245_v31 }
 0x1ae   :  { %v348_v33 = vpop.f32.mrf.mxu1 }
 0x1af   :  { %v252_v34 = vadd.f32 %v246_v32, %v22_v14 }
 0x1b0   :  { %v248_v35 = vpop.f32.mrf.mxu1 }
 0x1b1   :  { %v254_v36 = vmax.f32 %v252_v34, 0.0  ;;  %v249_v37 = vadd.f32 %v283_v30, %v248_v35 }
 0x1b2   :  { %v349_v38 = vpop.f32.mrf.mxu1 }
 0x1b3   :  { %256 = vst [vmem:[#allocation2] sm:$0xff] %v254_v36  ;;  %v253_v39 = vadd.f32 %v249_v37, %v23_v15 }
 0x1b5   :  { %v255_v40 = vmax.f32 %v253_v39, 0.0 }
 0x1b7   :  { %257 = vst [vmem:[#allocation2 + $0x8] sm:$0xff] %v255_v40 }
 0x1b8   :  { %382 = shalt.err (!%p379_p4)
}
 0x1b9   :  { %s396_s4 = smov 128   ;;  %s397_s7 = smov 8  }
 0x1ba   :  { %269 = dma.vmem_to_hbm [thread:$0]  %s264_s3, 256, %s496_s5, [#allocation3], %s396_s4, %s396_s4, %s397_s7  }
 0x1bb   :  { %391 = dma.done.wait [#allocation3], 256  }
 0x1bc   :  { %392 = vsyncadd [#allocation3], 4294967040 }
 0x1bd   :  { %273 = vsyncpa [#allocation3], 1 }

</bundles_post_ra>
